<compile_context>
chip_gen: v7x
topology: tpu7x:2x2x1
jax: 0.10.0
libtpu: 0.0.40
codegen_flags: <defaults>
</compile_context>

<pallas_src>
import functools

import jax
import jax.numpy as jnp
from jax.experimental import pallas as pl
from jax.experimental.pallas import tpu as pltpu


def _round_up(x, m):
    return ((x + m - 1) // m) * m


def _patch_embed_kernel(x_ref, w_ref, b_ref, o_ref):
    # x_ref: (TM, Kp) bf16 patches tile
    # w_ref: (Kp, TE) bf16 projection weight tile (VMEM-resident along M)
    # b_ref: (1, TE)  f32 bias tile               (VMEM-resident along M)
    # o_ref: (TM, TE) output tile
    acc = jnp.dot(x_ref[...], w_ref[...], preferred_element_type=jnp.float32)
    o_ref[...] = (acc + b_ref[...]).astype(o_ref.dtype)


@functools.partial(jax.jit, static_argnames=("patch_size",))
def patch_embed(x, weight, bias, patch_size):
    """x: (B, C, H, W); weight: (E, C, P, P); bias: (E,)  -> (B, N, E)."""
    compute_dtype = jnp.bfloat16   # MXU-native; accumulate in f32
    out_dtype = x.dtype

    B, C, H, W = x.shape
    E = weight.shape[0]
    P = patch_size
    assert H % P == 0 and W % P == 0
    Gh, Gw = H // P, W // P
    N = Gh * Gw
    K = C * P * P
    M = B * N

    # Lane-align contraction (K) and output (E) dims (no-op for ViT K=E=768).
    Kp = _round_up(K, 128)
    Ep = _round_up(E, 128)

    # ---- tile size over E (only split when embed dim is very large) -------
    if Ep <= 2048:
        TE = Ep
    else:
        TE = 1024
        Ep = _round_up(Ep, TE)

    # ---- tile size over M (VMEM-budgeted, v7x-safe) -----------------------
    in_b = jnp.dtype(compute_dtype).itemsize
    out_b = jnp.dtype(out_dtype).itemsize

    def vmem_est(t):
        return (2 * t * Kp * in_b        # double-buffered patches tile
                + 2 * Kp * TE * in_b     # weight tile (conservative: 2 bufs)
                + 2 * t * TE * out_b     # double-buffered output tile
                + 2 * TE * 4)            # bias tile

    TM = min(512, _round_up(M, 8))
    VMEM_BUDGET = 24 * 1024 * 1024       # stay under the 32 MiB scoped default
    while TM > 8 and vmem_est(TM) > VMEM_BUDGET:
        TM = _round_up(TM // 2, 8)
    Mp = _round_up(M, TM)

    # ---- im2col + dtype/layout prep (fuses into one producer pass) --------
    # (B, C, Gh, P, Gw, P) -> (B, Gh, Gw, C, P, P) -> (M, K); flatten order
    # (c, ph, pw) matches Conv2d weight layout (E, C, P, P).
    patches = x.reshape(B, C, Gh, P, Gw, P)
    patches = patches.transpose(0, 2, 4, 1, 3, 5).reshape(M, K)
    patches = patches.astype(compute_dtype)
    if (Mp, Kp) != (M, K):
        patches = jnp.pad(patches, ((0, Mp - M), (0, Kp - K)))

    w_mat = weight.reshape(E, K).T.astype(compute_dtype)      # (K, E)
    if (Kp, Ep) != (K, E):
        w_mat = jnp.pad(w_mat, ((0, Kp - K), (0, Ep - E)))
    b_mat = bias.astype(jnp.float32).reshape(1, E)
    if Ep != E:
        b_mat = jnp.pad(b_mat, ((0, 0), (0, Ep - E)))

    # ---- tiled matmul + bias (Pallas) --------------------------------------
    out = pl.pallas_call(
        _patch_embed_kernel,
        out_shape=jax.ShapeDtypeStruct((Mp, Ep), out_dtype),
        grid=(Ep // TE, Mp // TM),       # M innermost -> weight tile resident
        in_specs=[
            pl.BlockSpec((TM, Kp), lambda j, i: (i, 0)),   # patches: marches over M
            pl.BlockSpec((Kp, TE), lambda j, i: (0, j)),   # weight:  resident over M
            pl.BlockSpec((1, TE), lambda j, i: (0, j)),    # bias:    resident over M
        ],
        out_specs=pl.BlockSpec((TM, TE), lambda j, i: (i, j)),
        compiler_params=pltpu.CompilerParams(
            dimension_semantics=("parallel", "parallel"),  # independent tiles -> megacore
        ),
    )(patches, w_mat, b_mat)

    out = out[:M, :E].reshape(B, N, E)
    # norm_layer is None in this config -> nn.Identity(); nothing to apply.
    return out


if __name__ == "__main__":
    # Small shapes consistent with the module: B=2, C=4, H=W=16, patch=4, embed=32
    B, C, H, W = 2, 4, 16, 16
    P = 4
    E = 32

    key = jax.random.PRNGKey(0)
    kx, kw, kb = jax.random.split(key, 3)
    x = jax.random.normal(kx, (B, C, H, W), dtype=jnp.float32)
    weight = jax.random.normal(kw, (E, C, P, P), dtype=jnp.float32) * 0.02
    bias = jax.random.normal(kb, (E,), dtype=jnp.float32) * 0.02

    out = patch_embed(x, weight, bias, patch_size=P)
    out = jax.block_until_ready(out)

    # Reference: same math path as the PyTorch module (f32 conv).  The kernel
    # feeds the MXU bf16 inputs with f32 accumulation, hence the tolerance.
    ref = jax.lax.conv_general_dilated(
        x, weight, window_strides=(P, P), padding="VALID",
        dimension_numbers=("NCHW", "OIHW", "NCHW"),
    ) + bias.reshape(1, E, 1, 1)
    ref = ref.reshape(B, E, -1).transpose(0, 2, 1)  # flatten(2).transpose(1,2)

    assert out.shape == (B, (H // P) * (W // P), E)
    assert jnp.allclose(out.astype(jnp.float32), ref, atol=2e-2, rtol=2e-2)

    print("KERNEL_OK")
</pallas_src>

<mosaic_0001>
module attributes {stable_mosaic.version = 11 : i64} {
  func.func @_patch_embed_kernel(%arg0: i32, %arg1: i32, %arg2: memref<32x128xbf16, #tpu.memory_space<vmem>>, %arg3: memref<128x128xbf16, #tpu.memory_space<vmem>>, %arg4: memref<1x128xf32, #tpu.memory_space<vmem>>, %arg5: memref<32x128xf32, #tpu.memory_space<vmem>>) attributes {dimension_semantics = [#tpu.dimension_semantics<parallel>, #tpu.dimension_semantics<parallel>], iteration_bounds = array<i64: 1, 1>, scalar_prefetch = 0 : i64, scratch_operands = 0 : i64, tpu.core_type = #tpu.core_type<tc>, window_params = [{transform_indices = @transform_0, window_bounds = array<i64: 32, 128>}, {transform_indices = @transform_1, window_bounds = array<i64: 128, 128>}, {transform_indices = @transform_2, window_bounds = array<i64: 1, 128>}, {transform_indices = @transform_3, window_bounds = array<i64: 32, 128>}]} {
    %c0 = arith.constant 0 : index
    %c0_0 = arith.constant 0 : index
    %0 = vector.load %arg2[%c0, %c0_0] : memref<32x128xbf16, #tpu.memory_space<vmem>>, vector<32x128xbf16>
    %c0_1 = arith.constant 0 : index
    %c0_2 = arith.constant 0 : index
    %1 = vector.load %arg3[%c0_1, %c0_2] : memref<128x128xbf16, #tpu.memory_space<vmem>>, vector<128x128xbf16>
    %cst = arith.constant dense<0.000000e+00> : vector<32x128xf32>
    %2 = tpu.matmul %0, %1, %cst {dimension_numbers = #tpu.dot_dimension_numbers<[1], [0], [0], [1], [0, 0, 1, 1], [], []>} : vector<32x128xbf16>, vector<128x128xbf16>, vector<32x128xf32> -> vector<32x128xf32>
    %c0_3 = arith.constant 0 : index
    %c0_4 = arith.constant 0 : index
    %3 = vector.load %arg4[%c0_3, %c0_4] : memref<1x128xf32, #tpu.memory_space<vmem>>, vector<1x128xf32>
    %4 = vector.broadcast %3 : vector<1x128xf32> to vector<32x128xf32>
    %5 = arith.addf %2, %4 : vector<32x128xf32>
    %c0_5 = arith.constant 0 : index
    %c0_6 = arith.constant 0 : index
    %6 = vector.load %arg5[%c0_5, %c0_6] : memref<32x128xf32, #tpu.memory_space<vmem>>, vector<32x128xf32>
    tpu.vector_store %arg5[%c0_5, %c0_6], %5 {strides = array<i32>} : memref<32x128xf32, #tpu.memory_space<vmem>>, vector<32x128xf32>,
    return
  }
  func.func @transform_0(%arg0: i32, %arg1: i32) -> (i32, i32) {
    %c0_i32 = arith.constant 0 : i32
    %c0_i32_0 = arith.constant 0 : i32
    return %arg1, %c0_i32 : i32, i32
  }
  func.func @transform_1(%arg0: i32, %arg1: i32) -> (i32, i32) {
    %c0_i32 = arith.constant 0 : i32
    %c0_i32_0 = arith.constant 0 : i32
    return %c0_i32, %arg0 : i32, i32
  }
  func.func @transform_2(%arg0: i32, %arg1: i32) -> (i32, i32) {
    %c0_i32 = arith.constant 0 : i32
    %c0_i32_0 = arith.constant 0 : i32
    return %c0_i32, %arg0 : i32, i32
  }
  func.func @transform_3(%arg0: i32, %arg1: i32) -> (i32, i32) {
    %c0_i32 = arith.constant 0 : i32
    return %arg1, %arg0 : i32, i32
  }
}

</mosaic_0001>

<bundles_post_ra>
// kernel: patch_embed.1
= control target key start
LH: loop header
LB: loop body
LE: loop exit
PB: predicated region body
PF: predicated region fallthrough
CT: control target
= control target key end

     0   :  { %s318_s0 = inlined_call_operand.vmem [shape: bf16[32,128], index: 0, kind: input, shape index: {}]   ;;  %s319_s1 = inlined_call_operand.vmem [shape: bf16[128,128], index: 1, kind: input, shape index: {}]   ;;  %s320_s2 = inlined_call_operand.vmem [shape: f32[1,128], index: 2, kind: input, shape index: {}]   ;;  %s321_s3 = inlined_call_operand.hbm [shape: f32[32,128], index: 3, kind: output, shape index: {}]  }
   0x1   :  { %v216_v0 = vld [vmem:[%s319_s1] sm:$0xff]   ;;  %v217_v1 = vld [vmem:[%s319_s1 + $0x8] sm:$0xff]   ;;  %v218_v2 = vld [vmem:[%s319_s1 + $0x10] sm:$0xff]  }
   0x2   :  { %193 = vmatprep.subr.bf16.mxu0 %v216_v0  ;;  %v219_v3 = vld [vmem:[%s319_s1 + $0x18] sm:$0xff]   ;;  %v224_v4 = vld [vmem:[%s318_s0] sm:$0xff]  }
   0x3   :  { %194 = vmatpush3.bf16.msra.mxu0 %v216_v0  ;;  %209 = vmatprep.mubr.bf16.mxu0 %v224_v4 }
   0x4   :  { %195 = vmatprep.subr.bf16.mxu0 %v217_v1 }
   0x7   :  { %196 = vmatpush3.bf16.msra.mxu0 %v217_v1 }
   0x8   :  { %197 = vmatprep.subr.bf16.mxu0 %v218_v2 }
   0x9   :  { %8 = vsyncpa [#allocation3], 0  ;;  %v220_v5 = vld [vmem:[%s319_s1 + $0x20] sm:$0xff]   ;;  %v221_v6 = vld [vmem:[%s319_s1 + $0x28] sm:$0xff]   ;;  %s250_s7 = smov [#allocation2]  }
   0xa   :  { %v222_v7 = vld [vmem:[%s319_s1 + $0x30] sm:$0xff]   ;;  %v223_v8 = vld [vmem:[%s319_s1 + $0x38] sm:$0xff]   ;;  %v225_v9 = vld [vmem:[%s318_s0 + $0x8] sm:$0xff]   ;;  %s161_s8 = sshll.u32 %s250_s7, 4  ;;  %s162_s8 = int_to_ptr.vmem [resolvable:$true] %s161_s8 }
   0xb   :  { %198 = vmatpush3.bf16.msra.mxu0 %v218_v2  ;;  %v172_v10 = vld [vmem:[%s320_s2] ss:$0 sm:$0xff]  ;;  %s226_s0 = scalar_lea.vmem %s162_s8, 512  ;;  %p231_p1 = scmp.lt.s32.totalorder %s162_s8, %s162_s8 }
   0xc   :  { %199 = vmatprep.subr.bf16.mxu0 %v219_v3  ;;  %p227_p0 = scmp.ne.s32.totalorder %s162_s8, %s226_s0  ;;  %p232_p2 = scmp.lt.s32.totalorder %s226_s0, %s226_s0 }
   0xe   :  { %p233_p3 = por %p232_p2, %p231_p1 }
   0xf   :  { %200 = vmatpush3.bf16.msra.mxu0 %v219_v3 }
  0x10   :  { %201 = vmatprep.subr.bf16.mxu0 %v220_v5  ;;  %p234_p4 = pnand %p233_p3, %p227_p0 }
  0x13   :  { %202 = vmatpush3.bf16.msra.mxu0 %v220_v5 }
  0x14   :  { %203 = vmatprep.subr.bf16.mxu0 %v221_v6 }
  0x17   :  { %204 = vmatpush3.bf16.msra.mxu0 %v221_v6 }
  0x18   :  { %205 = vmatprep.subr.bf16.mxu0 %v222_v7 }
  0x1b   :  { %206 = vmatpush3.bf16.msra.mxu0 %v222_v7 }
  0x1c   :  { %207 = vmatprep.subr.bf16.mxu0 %v223_v8 }
  0x1f   :  { %208 = vmatpush3.bf16.msra.mxu0 %v223_v8 }
  0x22   :  { %210 = vmatmul.mubr.bf16.vlgmr.msra.gmra.mrb[0].mxu0 %v225_v9 }
  0xf5   :  { %v211_v11 = vpop.f32.mrb[0].mxu0 }
  0xf6   :  { %v146_v12 = vadd.f32 %v211_v11, %v172_v10  ;;  %v137_v13 = vpop.f32.mrb[1].mxu0 }
  0xf7   :  { %v138_v14 = vadd.f32 %v172_v10, %v137_v13  ;;  %v212_v15 = vpop.f32.mrb[2].mxu0 }
  0xf8   :  { %154 = vst [vmem:[#allocation2 + $0x10] sm:$0xff] %v146_v12  ;;  %v149_v16 = vadd.f32 %v212_v15, %v172_v10  ;;  %v140_v17 = vpop.f32.mrb[3].mxu0 }
  0xf9   :  { %152 = vst [vmem:[#allocation2] sm:$0xff] %v138_v14  ;;  %v141_v18 = vadd.f32 %v172_v10, %v140_v17 }
  0xfa   :  { %155 = vst [vmem:[#allocation2 + $0x18] sm:$0xff] %v149_v16 }
  0xfb   :  { %153 = vst [vmem:[#allocation2 + $0x8] sm:$0xff] %v141_v18 }
  0xfc   :  { %237 = shalt.err (!%p234_p4)
}
  0xfd   :  { %s238_s9 = scalar_lea.hbm %s321_s3, 512 }
  0xfe   :  { %p239_p5 = scmp.ne.s32.totalorder %s321_s3, %s238_s9  ;;  %p242_p6 = scmp.lt.u32.totalorder %s238_s9, %s321_s3 }
 0x100   :  { %p244_p7 = pnand %p242_p6, %p239_p5 }
 0x102   :  { %247 = shalt.err (!%p244_p7)
}
 0x103   :  { %s251_s14 = smov 128   ;;  %s252_s15 = smov 8  }
 0x104   :  { %167 = dma.vmem_to_hbm [thread:$0]  %s162_s8, 512, %s321_s3, [#allocation3], %s251_s14, %s251_s14, %s252_s15  }
 0x105   :  { %248 = dma.done.wait [#allocation3], 512  }
 0x106   :  { %249 = vsyncadd [#allocation3], 4294966784 }
 0x107   :  { %171 = vsyncpa [#allocation3], 1 }

</bundles_post_ra>
